<compile_context>
chip_gen: v7x
topology: tpu7x:2x2x1
jax: 0.10.0
libtpu: 0.0.40
codegen_flags: <defaults>
</compile_context>

<pallas_src>
from abc import ABC, abstractmethod

import jax
import jax.numpy as jnp
from jax.experimental import pallas as pl
from jax.experimental.pallas import tpu as pltpu

_LANES = 128           # vreg lane width (last dim maps here, lane-dense)
_TILE_R = 8192         # rows per tile; 8192 * 128 * 4B = 4 MiB f32 tile
                       # -> 16 MiB resident with double-buffered in+out
_VMEM_LIMIT = 32 * 1024 * 1024   # explicit scoped-VMEM budget (fits every gen)


# ----------------------------- Pallas kernels --------------------------------

def _identity_kernel(x_ref, o_ref):
    # Elementwise pass-through (the "forward" of the base rendering component).
    # Subclasses replace this body with real rendering compute.
    o_ref[...] = x_ref[...]


def _pallas_identity_2d(x2d: jax.Array) -> jax.Array:
    """Identity over a lane-dense (rows, 128) slab, tiled + pipelined in Pallas."""
    rows, cols = x2d.shape
    tile_r = min(_TILE_R, rows)                # full-extent block if slab is small
    grid = (pl.cdiv(rows, tile_r),)            # ragged last block -> masked stores (OK)
    bytes_accessed = 2 * x2d.size * x2d.dtype.itemsize
    return pl.pallas_call(
        _identity_kernel,
        out_shape=jax.ShapeDtypeStruct((rows, cols), x2d.dtype),
        grid=grid,
        in_specs=[pl.BlockSpec((tile_r, cols), lambda i: (i, 0))],
        out_specs=pl.BlockSpec((tile_r, cols), lambda i: (i, 0)),
        # Pure identity with identical index_maps -> aliasing is safe here.
        input_output_aliases={0: 0},
        cost_estimate=pl.CostEstimate(
            flops=0, transcendentals=0, bytes_accessed=bytes_accessed),
        compiler_params=pltpu.CompilerParams(
            # Independent tiles -> "parallel" lets v7x shard across its 2 TCs.
            # (No measurable effect on single-TC v5e/v6e.)
            dimension_semantics=("parallel",),
            vmem_limit_bytes=_VMEM_LIMIT,
        ),
    )(x2d)


def _pallas_identity_small(flat: jax.Array) -> jax.Array:
    """Identity over a tiny (<128-elem) array via a single full-extent block."""
    n = flat.shape[0]
    x2d = flat.reshape(1, n)                   # block == full array -> no (8,128) rule
    y2d = pl.pallas_call(
        _identity_kernel,
        out_shape=jax.ShapeDtypeStruct((1, n), flat.dtype),
        input_output_aliases={0: 0},
        cost_estimate=pl.CostEstimate(
            flops=0, transcendentals=0,
            bytes_accessed=2 * n * flat.dtype.itemsize),
        compiler_params=pltpu.CompilerParams(vmem_limit_bytes=_VMEM_LIMIT),
    )(x2d)
    return y2d.reshape(n)


@jax.jit
def _identity_forward(x: jax.Array) -> jax.Array:
    """Run the Pallas identity over x with no padding / re-slicing passes."""
    orig_shape = x.shape
    total = x.size
    flat = x.reshape(-1)
    n_aligned = (total // _LANES) * _LANES     # static at trace time

    if n_aligned == total:
        # Fully lane-aligned: one tiled, pipelined Pallas pass, zero extra traffic.
        y2d = _pallas_identity_2d(flat.reshape(total // _LANES, _LANES))
        return y2d.reshape(orig_shape)

    if n_aligned == 0:
        # Tiny array (< 128 elements): single full-extent block.
        return _pallas_identity_small(flat).reshape(orig_shape)

    # Mixed: 128-aligned prefix through the tiled kernel, <128-element tail as a
    # trivial XLA copy (avoids the old jnp.pad + output-slice 3x-traffic path).
    prefix = _pallas_identity_2d(
        flat[:n_aligned].reshape(n_aligned // _LANES, _LANES)).reshape(-1)
    tail = flat[n_aligned:]
    return jnp.concatenate([prefix, tail]).reshape(orig_shape)


# --------------------------- Module equivalent -------------------------------

class BaseRenderingComponent(ABC):
    """JAX/Pallas equivalent of the PyTorch abstract rendering component."""

    @classmethod
    def get(cls, *args) -> "BaseRenderingComponent":
        # TODO(synk): torch.nn.DataParallel multi-GPU wrapping has no single-device
        # Pallas equivalent; a single-device instance is returned.
        return cls(*args)

    @abstractmethod
    def forward(self, *args):
        """Implementations define forward passes."""
        raise NotImplementedError


class _PassthroughRenderingComponent(BaseRenderingComponent):
    """Minimal concrete subclass: forward is the identity (abstract base has no compute)."""

    def forward(self, x: jax.Array) -> jax.Array:
        return _identity_forward(x)


# --------------------------------- Demo --------------------------------------

if __name__ == "__main__":
    key = jax.random.PRNGKey(0)
    component = _PassthroughRenderingComponent.get()

    # NCHW, matching PyTorch convention. 2*4*16*16 = 2048 elems -> aligned tiled path.
    x = jax.random.normal(key, (2, 4, 16, 16), dtype=jnp.float32)
    y = jax.block_until_ready(component.forward(x))
    assert y.shape == x.shape and y.dtype == x.dtype
    assert bool(jnp.allclose(y, x))

    # Tiny non-128-multiple input (105 elems) -> single full-extent block path.
    x_odd = jax.random.normal(jax.random.PRNGKey(1), (1, 3, 5, 7), dtype=jnp.float32)
    y_odd = jax.block_until_ready(component.forward(x_odd))
    assert y_odd.shape == x_odd.shape
    assert bool(jnp.allclose(y_odd, x_odd))

    # Non-128-multiple input > 128 elems (150) -> aligned prefix + XLA tail path.
    x_mid = jax.random.normal(jax.random.PRNGKey(2), (3, 50), dtype=jnp.float32)
    y_mid = jax.block_until_ready(component.forward(x_mid))
    assert y_mid.shape == x_mid.shape
    assert bool(jnp.allclose(y_mid, x_mid))

    print("KERNEL_OK")
</pallas_src>

<mosaic_0001>
module attributes {stable_mosaic.version = 11 : i64} {
  func.func @_identity_kernel(%arg0: i32, %arg1: memref<16x128xf32, #tpu.memory_space<vmem>>, %arg2: memref<16x128xf32, #tpu.memory_space<vmem>>) attributes {dimension_semantics = [#tpu.dimension_semantics<parallel>], iteration_bounds = array<i64: 1>, scalar_prefetch = 0 : i64, scratch_operands = 0 : i64, tpu.core_type = #tpu.core_type<tc>, window_params = [{transform_indices = @transform_0, window_bounds = array<i64: 16, 128>}, {transform_indices = @transform_1, window_bounds = array<i64: 16, 128>}]} {
    %c0 = arith.constant 0 : index
    %c0_0 = arith.constant 0 : index
    %0 = vector.load %arg1[%c0, %c0_0] : memref<16x128xf32, #tpu.memory_space<vmem>>, vector<16x128xf32>
    %c0_1 = arith.constant 0 : index
    %c0_2 = arith.constant 0 : index
    %1 = vector.load %arg2[%c0_1, %c0_2] : memref<16x128xf32, #tpu.memory_space<vmem>>, vector<16x128xf32>
    tpu.vector_store %arg2[%c0_1, %c0_2], %0 {strides = array<i32>} : memref<16x128xf32, #tpu.memory_space<vmem>>, vector<16x128xf32>,
    return
  }
  func.func @transform_0(%arg0: i32) -> (i32, i32) {
    %c0_i32 = arith.constant 0 : i32
    %c0_i32_0 = arith.constant 0 : i32
    return %arg0, %c0_i32 : i32, i32
  }
  func.func @transform_1(%arg0: i32) -> (i32, i32) {
    %c0_i32 = arith.constant 0 : i32
    %c0_i32_0 = arith.constant 0 : i32
    return %arg0, %c0_i32 : i32, i32
  }
}

</mosaic_0001>

<bundles_post_ra>
// kernel: _identity_forward.1
= control target key start
LH: loop header
LB: loop body
LE: loop exit
PB: predicated region body
PF: predicated region fallthrough
CT: control target
= control target key end

     0   :  { %s38_s0 = inlined_call_operand.vmem [shape: f32[16,128], index: 0, kind: input, shape index: {}, may-alias: {0,1}]   ;;  %s39_s1 = inlined_call_operand.vmem [shape: f32[16,128], index: 1, kind: output, shape index: {}, may-alias: {0,1}]  }
   0x1   :  { %v8_v0 = vld [vmem:[%s38_s0] sm:$0xff]  ;;  %v9_v1 = vld [vmem:[%s38_s0 + $0x8] sm:$0xff] }
   0x2   :  { %10 = vst [vmem:[%s39_s1] sm:$0xff] %v8_v0  ;;  %11 = vst [vmem:[%s39_s1 + $0x8] sm:$0xff] %v9_v1 }

</bundles_post_ra>
